<compile_context>
chip_gen: v7x
topology: tpu7x:2x2x1
jax: 0.10.0
libtpu: 0.0.40
codegen_flags: <defaults>
</compile_context>

<pallas_src>
import functools

import jax
import jax.numpy as jnp
from jax.experimental import pallas as pl
from jax.experimental.pallas import tpu as pltpu


def _round_up(x, m):
    return ((x + m - 1) // m) * m


def _mxu_width():
    """256 for v6e/v7x-class chips, 128 for v5e.  Falls back to 256."""
    try:
        kind = jax.devices()[0].device_kind.lower()
    except Exception:
        return 256
    if "v5 lite" in kind or "v5e" in kind or "v5lite" in kind:
        return 128
    return 256


def _block_diag(w, p):
    """(d_in, d_out) -> block-diagonal (p*d_in, p*d_out) holding p copies of w."""
    if p == 1:
        return w
    return jnp.kron(jnp.eye(p, dtype=w.dtype), w)


def _mlp_kernel(n_layers, x_ref, *refs):
    """refs = (w0, b0, w1, b1, ..., out_ref). Weights bf16, biases f32."""
    out_ref = refs[-1]
    param_refs = refs[:-1]

    h = x_ref[...]                                 # bf16 (tbp, P*d0)
    for i in range(n_layers):
        w = param_refs[2 * i][...]                 # bf16 (P*di, P*do), VMEM-resident
        b = param_refs[2 * i + 1][...]             # f32  (1, P*do)
        # bf16 MXU operands, f32 accumulation (block-diag zeros are exact in f32).
        h = jnp.dot(h, w, preferred_element_type=jnp.float32) + b
        if i != n_layers - 1:                      # no activation after the last layer
            h = jnp.tanh(h)                        # f32 tanh -> EUP, overlaps MXU
            h = h.astype(jnp.bfloat16)             # next layer's MXU operand
    out_ref[...] = h.astype(out_ref.dtype)


def mlp_forward(x, weights, biases, *, tb=4096, pack=None):
    """Fused MLP forward as one Pallas call, batch-packed + tiled over the batch.

    x:       (batch, seq_net[0]) float32
    weights: list of (seq_net[i], seq_net[i+1]) arrays
    biases:  list of (seq_net[i+1],) arrays
    """
    assert len(weights) == len(biases)
    n_layers = len(weights)
    batch, in_dim = x.shape
    out_dim = weights[-1].shape[1]

    # Packing factor: fill the MXU lanes/K with P stacked copies of each layer.
    dims = [in_dim] + [w.shape[1] for w in weights]
    if pack is None:
        P = max(1, _mxu_width() // max(dims))
    else:
        P = max(1, int(pack))

    # Batch tile (in original rows): tb/P packed rows must be a multiple of 16
    # (bf16 sublane tile); cap so large batches keep >= 2 grid steps (v7x: 2 TCs).
    min_tb = 16 * P
    tb = _round_up(min(tb, _round_up(batch, min_tb)), min_tb)
    if batch >= 2 * min_tb:
        half = _round_up((batch + 1) // 2, min_tb)
        tb = min(tb, half)
    padded = _round_up(batch, tb)

    if padded != batch:
        x = jnp.pad(x, ((0, padded - batch), (0, 0)))

    # Pack: row r of xp holds original rows r*P .. r*P+P-1 concatenated on features.
    xp = x.astype(jnp.bfloat16).reshape(padded // P, P * in_dim)
    tbp = tb // P

    args = [xp]
    in_specs = [pl.BlockSpec((tbp, P * in_dim), lambda i: (i, 0))]
    for w, b in zip(weights, biases):
        wb = _block_diag(w.astype(jnp.float32), P).astype(jnp.bfloat16)
        bb = jnp.tile(b.astype(jnp.float32), P).reshape(1, -1)
        args += [wb, bb]
        # Constant block index -> weights/biases stay VMEM-resident across grid steps.
        in_specs += [
            pl.BlockSpec(wb.shape, lambda i: (0, 0)),
            pl.BlockSpec(bb.shape, lambda i: (0, 0)),
        ]

    kernel = functools.partial(_mlp_kernel, n_layers)

    out = pl.pallas_call(
        kernel,
        out_shape=jax.ShapeDtypeStruct((padded // P, P * out_dim), jnp.float32),
        grid=(padded // tb,),
        in_specs=in_specs,
        out_specs=pl.BlockSpec((tbp, P * out_dim), lambda i: (i, 0)),
        compiler_params=pltpu.CompilerParams(
            dimension_semantics=("parallel",),     # shard batch across TCs on v7x
        ),
    )(*args)
    return out.reshape(padded, out_dim)[:batch]


def init_params(key, seq_net):
    """Matches the PyTorch module: xavier_normal_(weight, gain=1), bias = 0."""
    weights, biases = [], []
    for i in range(len(seq_net) - 1):
        fan_in, fan_out = seq_net[i], seq_net[i + 1]
        key, sub = jax.random.split(key)
        std = (2.0 / (fan_in + fan_out)) ** 0.5    # gain = 1.0
        weights.append(std * jax.random.normal(sub, (fan_in, fan_out), jnp.float32))
        biases.append(jnp.zeros((fan_out,), jnp.float32))
    return weights, biases


def reference_forward(x, weights, biases):
    """Pure-JAX reference mimicking the kernel's bf16-operand / f32-accumulate dots."""
    h = x.astype(jnp.bfloat16).astype(jnp.float32)
    for i, (w, b) in enumerate(zip(weights, biases)):
        wb = w.astype(jnp.bfloat16).astype(jnp.float32)
        h = jnp.dot(h, wb, precision=jax.lax.Precision.HIGHEST) + b
        if i != len(weights) - 1:
            h = jnp.tanh(h)
            h = h.astype(jnp.bfloat16).astype(jnp.float32)
    return h


if __name__ == "__main__":
    key = jax.random.PRNGKey(0)

    # Typical PINN topology: 2 inputs (x, t) -> hidden 32 x3 -> 1 output.
    seq_net = [2, 32, 32, 32, 1]

    key, k_params = jax.random.split(key)
    weights, biases = init_params(k_params, seq_net)
    # Extra bias coverage (trained Nets have nonzero biases; init above is zero).
    biases_nz = [b + 0.05 * (i + 1) for i, b in enumerate(biases)]

    # Single-tile case, default-tile multi-step case, explicit small-tile case
    # (exercises padding, >=2-step grid, and the 3-step grid path).
    cases = ((8, 4096, biases), (700, 4096, biases_nz), (700, 256, biases_nz))
    for batch, tb, bs in cases:
        key, kx = jax.random.split(key)
        x = jax.random.normal(kx, (batch, seq_net[0]), dtype=jnp.float32)

        out = jax.block_until_ready(mlp_forward(x, weights, bs, tb=tb))
        ref = reference_forward(x, weights, bs)

        assert out.shape == (batch, seq_net[-1])
        err = float(jnp.max(jnp.abs(out - ref)))
        assert bool(jnp.allclose(out, ref, atol=1e-4, rtol=1e-4)), f"max err {err}"

    print("KERNEL_OK")
</pallas_src>

<mosaic_0001>
module attributes {stable_mosaic.version = 11 : i64} {
  func.func @_mlp_kernel(%arg0: i32, %arg1: memref<16x16xbf16, #tpu.memory_space<vmem>>, %arg2: memref<16x256xbf16, #tpu.memory_space<vmem>>, %arg3: memref<1x256xf32, #tpu.memory_space<vmem>>, %arg4: memref<256x256xbf16, #tpu.memory_space<vmem>>, %arg5: memref<1x256xf32, #tpu.memory_space<vmem>>, %arg6: memref<256x256xbf16, #tpu.memory_space<vmem>>, %arg7: memref<1x256xf32, #tpu.memory_space<vmem>>, %arg8: memref<256x8xbf16, #tpu.memory_space<vmem>>, %arg9: memref<1x8xf32, #tpu.memory_space<vmem>>, %arg10: memref<16x8xf32, #tpu.memory_space<vmem>>) attributes {dimension_semantics = [#tpu.dimension_semantics<parallel>], iteration_bounds = array<i64: 1>, scalar_prefetch = 0 : i64, scratch_operands = 0 : i64, tpu.core_type = #tpu.core_type<tc>, window_params = [{transform_indices = @transform_0, window_bounds = array<i64: 16, 16>}, {pipeline_mode = #tpu.pipeline_mode<synchronous>, transform_indices = @transform_1, window_bounds = array<i64: 16, 256>}, {pipeline_mode = #tpu.pipeline_mode<synchronous>, transform_indices = @transform_2, window_bounds = array<i64: 1, 256>}, {pipeline_mode = #tpu.pipeline_mode<synchronous>, transform_indices = @transform_3, window_bounds = array<i64: 256, 256>}, {pipeline_mode = #tpu.pipeline_mode<synchronous>, transform_indices = @transform_4, window_bounds = array<i64: 1, 256>}, {pipeline_mode = #tpu.pipeline_mode<synchronous>, transform_indices = @transform_5, window_bounds = array<i64: 256, 256>}, {pipeline_mode = #tpu.pipeline_mode<synchronous>, transform_indices = @transform_6, window_bounds = array<i64: 1, 256>}, {pipeline_mode = #tpu.pipeline_mode<synchronous>, transform_indices = @transform_7, window_bounds = array<i64: 256, 8>}, {pipeline_mode = #tpu.pipeline_mode<synchronous>, transform_indices = @transform_8, window_bounds = array<i64: 1, 8>}, {transform_indices = @transform_9, window_bounds = array<i64: 16, 8>}]} {
    %c0 = arith.constant 0 : index
    %c0_0 = arith.constant 0 : index
    %0 = vector.load %arg1[%c0, %c0_0] : memref<16x16xbf16, #tpu.memory_space<vmem>>, vector<16x16xbf16>
    %c0_1 = arith.constant 0 : index
    %c0_2 = arith.constant 0 : index
    %1 = vector.load %arg2[%c0_1, %c0_2] : memref<16x256xbf16, #tpu.memory_space<vmem>>, vector<16x256xbf16>
    %c0_3 = arith.constant 0 : index
    %c0_4 = arith.constant 0 : index
    %2 = vector.load %arg3[%c0_3, %c0_4] : memref<1x256xf32, #tpu.memory_space<vmem>>, vector<1x256xf32>
    %cst = arith.constant dense<0.000000e+00> : vector<16x256xf32>
    %3 = tpu.matmul %0, %1, %cst {dimension_numbers = #tpu.dot_dimension_numbers<[1], [0], [0], [1], [0, 0, 1, 1], [], []>} : vector<16x16xbf16>, vector<16x256xbf16>, vector<16x256xf32> -> vector<16x256xf32>
    %4 = vector.broadcast %2 : vector<1x256xf32> to vector<16x256xf32>
    %5 = arith.addf %3, %4 : vector<16x256xf32>
    %6 = math.tanh %5 : vector<16x256xf32>
    %7 = arith.truncf %6 : vector<16x256xf32> to vector<16x256xbf16>
    %c0_5 = arith.constant 0 : index
    %c0_6 = arith.constant 0 : index
    %8 = vector.load %arg4[%c0_5, %c0_6] : memref<256x256xbf16, #tpu.memory_space<vmem>>, vector<256x256xbf16>
    %c0_7 = arith.constant 0 : index
    %c0_8 = arith.constant 0 : index
    %9 = vector.load %arg5[%c0_7, %c0_8] : memref<1x256xf32, #tpu.memory_space<vmem>>, vector<1x256xf32>
    %cst_9 = arith.constant dense<0.000000e+00> : vector<16x256xf32>
    %10 = tpu.matmul %7, %8, %cst_9 {dimension_numbers = #tpu.dot_dimension_numbers<[1], [0], [0], [1], [0, 0, 1, 1], [], []>} : vector<16x256xbf16>, vector<256x256xbf16>, vector<16x256xf32> -> vector<16x256xf32>
    %11 = vector.broadcast %9 : vector<1x256xf32> to vector<16x256xf32>
    %12 = arith.addf %10, %11 : vector<16x256xf32>
    %13 = math.tanh %12 : vector<16x256xf32>
    %14 = arith.truncf %13 : vector<16x256xf32> to vector<16x256xbf16>
    %c0_10 = arith.constant 0 : index
    %c0_11 = arith.constant 0 : index
    %15 = vector.load %arg6[%c0_10, %c0_11] : memref<256x256xbf16, #tpu.memory_space<vmem>>, vector<256x256xbf16>
    %c0_12 = arith.constant 0 : index
    %c0_13 = arith.constant 0 : index
    %16 = vector.load %arg7[%c0_12, %c0_13] : memref<1x256xf32, #tpu.memory_space<vmem>>, vector<1x256xf32>
    %cst_14 = arith.constant dense<0.000000e+00> : vector<16x256xf32>
    %17 = tpu.matmul %14, %15, %cst_14 {dimension_numbers = #tpu.dot_dimension_numbers<[1], [0], [0], [1], [0, 0, 1, 1], [], []>} : vector<16x256xbf16>, vector<256x256xbf16>, vector<16x256xf32> -> vector<16x256xf32>
    %18 = vector.broadcast %16 : vector<1x256xf32> to vector<16x256xf32>
    %19 = arith.addf %17, %18 : vector<16x256xf32>
    %20 = math.tanh %19 : vector<16x256xf32>
    %21 = arith.truncf %20 : vector<16x256xf32> to vector<16x256xbf16>
    %c0_15 = arith.constant 0 : index
    %c0_16 = arith.constant 0 : index
    %22 = vector.load %arg8[%c0_15, %c0_16] : memref<256x8xbf16, #tpu.memory_space<vmem>>, vector<256x8xbf16>
    %c0_17 = arith.constant 0 : index
    %c0_18 = arith.constant 0 : index
    %23 = vector.load %arg9[%c0_17, %c0_18] : memref<1x8xf32, #tpu.memory_space<vmem>>, vector<1x8xf32>
    %cst_19 = arith.constant dense<0.000000e+00> : vector<16x8xf32>
    %24 = tpu.matmul %21, %22, %cst_19 {dimension_numbers = #tpu.dot_dimension_numbers<[1], [0], [0], [1], [0, 0, 1, 1], [], []>} : vector<16x256xbf16>, vector<256x8xbf16>, vector<16x8xf32> -> vector<16x8xf32>
    %25 = vector.broadcast %23 : vector<1x8xf32> to vector<16x8xf32>
    %26 = arith.addf %24, %25 : vector<16x8xf32>
    %c0_20 = arith.constant 0 : index
    %c0_21 = arith.constant 0 : index
    %27 = vector.load %arg10[%c0_20, %c0_21] : memref<16x8xf32, #tpu.memory_space<vmem>>, vector<16x8xf32>
    tpu.vector_store %arg10[%c0_20, %c0_21], %26 {strides = array<i32>} : memref<16x8xf32, #tpu.memory_space<vmem>>, vector<16x8xf32>,
    return
  }
  func.func @transform_0(%arg0: i32) -> (i32, i32) {
    %c0_i32 = arith.constant 0 : i32
    %c0_i32_0 = arith.constant 0 : i32
    return %arg0, %c0_i32 : i32, i32
  }
  func.func @transform_1(%arg0: i32) -> (i32, i32) {
    %c0_i32 = arith.constant 0 : i32
    %c0_i32_0 = arith.constant 0 : i32
    %c0_i32_1 = arith.constant 0 : i32
    return %c0_i32, %c0_i32_0 : i32, i32
  }
  func.func @transform_2(%arg0: i32) -> (i32, i32) {
    %c0_i32 = arith.constant 0 : i32
    %c0_i32_0 = arith.constant 0 : i32
    %c0_i32_1 = arith.constant 0 : i32
    return %c0_i32, %c0_i32_0 : i32, i32
  }
  func.func @transform_3(%arg0: i32) -> (i32, i32) {
    %c0_i32 = arith.constant 0 : i32
    %c0_i32_0 = arith.constant 0 : i32
    %c0_i32_1 = arith.constant 0 : i32
    return %c0_i32, %c0_i32_0 : i32, i32
  }
  func.func @transform_4(%arg0: i32) -> (i32, i32) {
    %c0_i32 = arith.constant 0 : i32
    %c0_i32_0 = arith.constant 0 : i32
    %c0_i32_1 = arith.constant 0 : i32
    return %c0_i32, %c0_i32_0 : i32, i32
  }
  func.func @transform_5(%arg0: i32) -> (i32, i32) {
    %c0_i32 = arith.constant 0 : i32
    %c0_i32_0 = arith.constant 0 : i32
    %c0_i32_1 = arith.constant 0 : i32
    return %c0_i32, %c0_i32_0 : i32, i32
  }
  func.func @transform_6(%arg0: i32) -> (i32, i32) {
    %c0_i32 = arith.constant 0 : i32
    %c0_i32_0 = arith.constant 0 : i32
    %c0_i32_1 = arith.constant 0 : i32
    return %c0_i32, %c0_i32_0 : i32, i32
  }
  func.func @transform_7(%arg0: i32) -> (i32, i32) {
    %c0_i32 = arith.constant 0 : i32
    %c0_i32_0 = arith.constant 0 : i32
    %c0_i32_1 = arith.constant 0 : i32
    return %c0_i32, %c0_i32_0 : i32, i32
  }
  func.func @transform_8(%arg0: i32) -> (i32, i32) {
    %c0_i32 = arith.constant 0 : i32
    %c0_i32_0 = arith.constant 0 : i32
    %c0_i32_1 = arith.constant 0 : i32
    return %c0_i32, %c0_i32_0 : i32, i32
  }
  func.func @transform_9(%arg0: i32) -> (i32, i32) {
    %c0_i32 = arith.constant 0 : i32
    %c0_i32_0 = arith.constant 0 : i32
    return %arg0, %c0_i32 : i32, i32
  }
}

</mosaic_0001>

<bundles_post_ra>
// kernel: tpu_custom_call.1
= control target key start
LH: loop header
LB: loop body
LE: loop exit
PB: predicated region body
PF: predicated region fallthrough
CT: control target
= control target key end

     0   :  { %14 = vsyncpa [#allocation3], 0  ;;  %s1300_s0 = inlined_call_operand.vmem [shape: bf16[16,16], index: 0, kind: input, shape index: {}]   ;;  %s1301_s1 = inlined_call_operand.vmem [shape: bf16[16,256], index: 1, kind: input, shape index: {}]   ;;  %s1302_s2 = inlined_call_operand.vmem [shape: f32[1,256], index: 2, kind: input, shape index: {}]   ;;  %s1303_s3 = inlined_call_operand.hbm [shape: bf16[256,256], index: 3, kind: input, shape index: {}]   ;;  %s1304_s4 = inlined_call_operand.vmem [shape: f32[1,256], index: 4, kind: input, shape index: {}]   ;;  %s1305_s5 = inlined_call_operand.hbm [shape: bf16[256,256], index: 5, kind: input, shape index: {}]   ;;  %s1306_s6 = inlined_call_operand.vmem [shape: f32[1,256], index: 6, kind: input, shape index: {}]   ;;  %s1307_s7 = inlined_call_operand.vmem [shape: bf16[256,8], index: 7, kind: input, shape index: {}]   ;;  %s1308_s8 = inlined_call_operand.vmem [shape: f32[1,8], index: 8, kind: input, shape index: {}]   ;;  %s1309_s9 = inlined_call_operand.vmem [shape: f32[16,8], index: 9, kind: output, shape index: {}]  }
   0x1   :  { %15 = vsyncpa [#allocation5], 0  ;;  %s1136_s30 = smov [#allocation2]   ;;  %s1088_s13 = scalar_lea.hbm %s1303_s3, 4096 }
   0x2   :  { %s27_s10 = sshll.u32 %s1136_s30, 4  ;;  %p1089_p0 = scmp.ne.s32.totalorder %s1303_s3, %s1088_s13  ;;  %s28_s10 = int_to_ptr.vmem [resolvable:$true] %s27_s10 }
   0x3   :  { %p1092_p1 = scmp.lt.u32.totalorder %s1088_s13, %s1303_s3 }
   0x5   :  { %p1094_p2 = pnand %p1092_p1, %p1089_p0 }
   0x7   :  { %1097 = shalt.err (!%p1094_p2)
}
   0x8   :  { %s1098_s18 = scalar_lea.vmem %s28_s10, 4096  ;;  %p1103_p4 = scmp.lt.s32.totalorder %s28_s10, %s28_s10 }
   0x9   :  { %p1099_p3 = scmp.ne.s32.totalorder %s28_s10, %s1098_s18  ;;  %p1104_p5 = scmp.lt.s32.totalorder %s1098_s18, %s1098_s18 }
   0xb   :  { %p1105_p6 = por %p1104_p5, %p1103_p4 }
   0xd   :  { %p1106_p7 = pnand %p1105_p6, %p1099_p3 }
   0xf   :  { %1109 = shalt.err (!%p1106_p7)
}
  0x10   :  { %s1137_s19 = smov 128   ;;  %s1138_s20 = smov 8  }
  0x11   :  { %33 = dma.hbm_to_vmem [thread:$0]  %s1303_s3, 4096, %s28_s10, [#allocation3], %s1137_s19, %s1137_s19, %s1138_s20  }
  0x12   :  { %s1139_s23 = smov [#allocation4]   ;;  %s1110_s27 = scalar_lea.hbm %s1305_s5, 4096 }
  0x13   :  { %s41_s24 = sshll.u32 %s1139_s23, 4  ;;  %p1111_p8 = scmp.ne.s32.totalorder %s1305_s5, %s1110_s27  ;;  %s42_s24 = int_to_ptr.vmem [resolvable:$true] %s41_s24 }
  0x14   :  { %p1114_p9 = scmp.lt.u32.totalorder %s1110_s27, %s1305_s5 }
  0x16   :  { %p1116_p10 = pnand %p1114_p9, %p1111_p8 }
  0x18   :  { %1119 = shalt.err (!%p1116_p10)
}
  0x19   :  { %s1120_s12 = scalar_lea.vmem %s42_s24, 4096  ;;  %p1125_p12 = scmp.lt.s32.totalorder %s42_s24, %s42_s24 }
  0x1a   :  { %p1121_p11 = scmp.ne.s32.totalorder %s42_s24, %s1120_s12  ;;  %p1126_p13 = scmp.lt.s32.totalorder %s1120_s12, %s1120_s12 }
  0x1c   :  { %p1127_p0 = por %p1126_p13, %p1125_p12 }
  0x1e   :  { %p1128_p1 = pnand %p1127_p0, %p1121_p11 }
  0x20   :  { %1131 = shalt.err (!%p1128_p1)
}
  0x21   :  { %47 = dma.hbm_to_vmem [thread:$0]  %s1305_s5, 4096, %s42_s24, [#allocation5], %s1137_s19, %s1137_s19, %s1138_s20  }
  0x22   :  { %1132 = dma.done.wait [#allocation3], 4096  }
  0x23   :  { %1133 = vsyncadd [#allocation3], 4294963200 }
  0x24   :  { %1134 = dma.done.wait [#allocation5], 4096  }
  0x25   :  { %1135 = vsyncadd [#allocation5], 4294963200  ;;  %v1140_v0 = vmov 0   ;;  %v948_v1 = vld [vmem:[%s1301_s1 + $0x4] ss:$8 sps:$4 sm:$0xff]   ;;  %vm92_vm0 = vcmask 130048   ;;  %v67_v58 = vlaneseq }
  0x26   :  { %128 = vmatprep.mubr.bf16.mxu0 %v1140_v0  ;;  %v950_v2 = vld [vmem:[%s1301_s1] ss:$8 sps:$4 sm:$0xff]   ;;  %96 = vmatprep.subr.bf16.mxu0 %v948_v1  ;;  %v952_v4 = vld [vmem:[#allocation2 + $0x4] ss:$8 sps:$4 sm:$0xff]   ;;  %v955_v6 = vld [vmem:[#allocation2 + $0x14] ss:$8 sps:$4 sm:$0xff]  }
  0x27   :  { %v951_v3 = vld [vmem:[%s1300_s0] sm:$0xff]   ;;  %97 = vmatpush1.bf16.msra.mxu0 %v950_v2  ;;  %349 = vmatprep.subr.bf16.mxu1 %v952_v4  ;;  %v957_v7 = vld [vmem:[#allocation2 + $0x10] ss:$8 sps:$4 sm:$0xff]   ;;  %v961_v10 = vld [vmem:[#allocation2 + $0x34] ss:$8 sps:$4 sm:$0xff]   ;;  %v68_v59 = vshrl.u32 %v67_v58, 7 }
  0x28   :  { %v954_v5 = vld [vmem:[#allocation2] ss:$8 sps:$4 sm:$0xff]   ;;  %v958_v8 = vld [vmem:[#allocation2 + $0x24] ss:$8 sps:$4 sm:$0xff]   ;;  %v963_v11 = vld [vmem:[#allocation2 + $0x30] ss:$8 sps:$4 sm:$0xff]  }
  0x29   :  { %350 = vmatpush1.bf16.msra.mxu1 %v954_v5  ;;  %v960_v9 = vld [vmem:[#allocation2 + $0x20] ss:$8 sps:$4 sm:$0xff]   ;;  %v964_v12 = vld [vmem:[#allocation2 + $0x44] ss:$8 sps:$4 sm:$0xff]   ;;  %v967_v14 = vld [vmem:[#allocation2 + $0x54] ss:$8 sps:$4 sm:$0xff]  }
  0x2a   :  { %839 = vmatmul.mubr.msk.bf16.vlgmr.msra.gmra.mrb[0].mxu0 %vm92_vm0, %v951_v3  ;;  %351 = vmatprep.subr.bf16.mxu1 %v955_v6  ;;  %v966_v13 = vld [vmem:[#allocation2 + $0x40] ss:$8 sps:$4 sm:$0xff]   ;;  %v969_v15 = vld [vmem:[#allocation2 + $0x50] ss:$8 sps:$4 sm:$0xff]   ;;  %v970_v16 = vld [vmem:[#allocation2 + $0x64] ss:$8 sps:$4 sm:$0xff]  }
  0x2b   :  { %v972_v17 = vld [vmem:[#allocation2 + $0x60] ss:$8 sps:$4 sm:$0xff]   ;;  %v973_v18 = vld [vmem:[#allocation2 + $0x74] ss:$8 sps:$4 sm:$0xff]   ;;  %v975_v19 = vld [vmem:[#allocation2 + $0x70] ss:$8 sps:$4 sm:$0xff]  }
  0x2c   :  { %v976_v20 = vld [vmem:[#allocation2 + $0x84] ss:$8 sps:$4 sm:$0xff]   ;;  %v978_v21 = vld [vmem:[#allocation2 + $0x80] ss:$8 sps:$4 sm:$0xff]   ;;  %v979_v22 = vld [vmem:[#allocation2 + $0x94] ss:$8 sps:$4 sm:$0xff]  }
  0x2d   :  { %352 = vmatpush1.bf16.msra.mxu1 %v957_v7  ;;  %v981_v23 = vld [vmem:[#allocation2 + $0x90] ss:$8 sps:$4 sm:$0xff]   ;;  %v982_v24 = vld [vmem:[#allocation2 + $0xa4] ss:$8 sps:$4 sm:$0xff]   ;;  %v984_v25 = vld [vmem:[#allocation2 + $0xa0] ss:$8 sps:$4 sm:$0xff]  }
  0x2e   :  { %353 = vmatprep.subr.bf16.mxu1 %v958_v8  ;;  %v985_v26 = vld [vmem:[#allocation2 + $0xb4] ss:$8 sps:$4 sm:$0xff]   ;;  %v987_v27 = vld [vmem:[#allocation2 + $0xb0] ss:$8 sps:$4 sm:$0xff]   ;;  %v988_v28 = vld [vmem:[#allocation2 + $0xc4] ss:$8 sps:$4 sm:$0xff]  }
  0x2f   :  { %v990_v29 = vld [vmem:[#allocation2 + $0xc0] ss:$8 sps:$4 sm:$0xff]   ;;  %v991_v30 = vld [vmem:[#allocation2 + $0xd4] ss:$8 sps:$4 sm:$0xff]   ;;  %v993_v31 = vld [vmem:[#allocation2 + $0xd0] ss:$8 sps:$4 sm:$0xff]  }
  0x30   :  { %v994_v32 = vld [vmem:[#allocation2 + $0xe4] ss:$8 sps:$4 sm:$0xff]   ;;  %v996_v33 = vld [vmem:[#allocation2 + $0xe0] ss:$8 sps:$4 sm:$0xff]   ;;  %v997_v34 = vld [vmem:[#allocation2 + $0xf4] ss:$8 sps:$4 sm:$0xff]  }
  0x31   :  { %354 = vmatpush1.bf16.msra.mxu1 %v960_v9  ;;  %v999_v35 = vld [vmem:[#allocation2 + $0xf0] ss:$8 sps:$4 sm:$0xff]   ;;  %v1000_v36 = vld [vmem:[#allocation4] ss:$8 sps:$4 sm:$0xff]   ;;  %v1002_v37 = vld [vmem:[#allocation4 + $0x4] ss:$8 sps:$4 sm:$0xff]  }
  0x32   :  { %355 = vmatprep.subr.bf16.mxu1 %v961_v10  ;;  %v1005_v38 = vld [vmem:[#allocation4 + $0x14] ss:$8 sps:$4 sm:$0xff]   ;;  %602 = vmatprep.subr.bf16.mxu0 %v1002_v37  ;;  %v1003_v39 = vld [vmem:[#allocation4 + $0x10] ss:$8 sps:$4 sm:$0xff]   ;;  %v1008_v40 = vld [vmem:[#allocation4 + $0x24] ss:$8 sps:$4 sm:$0xff]  }
  0x33   :  { %603 = vmatpush1.bf16.msra.mxu0 %v1000_v36  ;;  %v1006_v41 = vld [vmem:[#allocation4 + $0x20] ss:$8 sps:$4 sm:$0xff]   ;;  %v1011_v42 = vld [vmem:[#allocation4 + $0x34] ss:$8 sps:$4 sm:$0xff]   ;;  %v1009_v43 = vld [vmem:[#allocation4 + $0x30] ss:$8 sps:$4 sm:$0xff]  }
  0x34   :  { %604 = vmatprep.subr.bf16.mxu0 %v1005_v38  ;;  %v1014_v44 = vld [vmem:[#allocation4 + $0x44] ss:$8 sps:$4 sm:$0xff]   ;;  %v1012_v45 = vld [vmem:[#allocation4 + $0x40] ss:$8 sps:$4 sm:$0xff]   ;;  %v1017_v46 = vld [vmem:[#allocation4 + $0x54] ss:$8 sps:$4 sm:$0xff]  }
  0x35   :  { %356 = vmatpush1.bf16.msra.mxu1 %v963_v11  ;;  %v1015_v47 = vld [vmem:[#allocation4 + $0x50] ss:$8 sps:$4 sm:$0xff]   ;;  %v1020_v48 = vld [vmem:[#allocation4 + $0x64] ss:$8 sps:$4 sm:$0xff]   ;;  %v1018_v49 = vld [vmem:[#allocation4 + $0x60] ss:$8 sps:$4 sm:$0xff]  }
  0x36   :  { %357 = vmatprep.subr.bf16.mxu1 %v964_v12  ;;  %v1023_v50 = vld [vmem:[#allocation4 + $0x74] ss:$8 sps:$4 sm:$0xff]   ;;  %v1021_v51 = vld [vmem:[#allocation4 + $0x70] ss:$8 sps:$4 sm:$0xff]   ;;  %v1026_v52 = vld [vmem:[#allocation4 + $0x84] ss:$8 sps:$4 sm:$0xff]  }
  0x37   :  { %605 = vmatpush1.bf16.msra.mxu0 %v1003_v39  ;;  %v1024_v53 = vld [vmem:[#allocation4 + $0x80] ss:$8 sps:$4 sm:$0xff]   ;;  %v1029_v54 = vld [vmem:[#allocation4 + $0x94] ss:$8 sps:$4 sm:$0xff]   ;;  %v1027_v55 = vld [vmem:[#allocation4 + $0x90] ss:$8 sps:$4 sm:$0xff]  }
  0x38   :  { %606 = vmatprep.subr.bf16.mxu0 %v1008_v40  ;;  %v1032_v56 = vld [vmem:[#allocation4 + $0xa4] ss:$8 sps:$4 sm:$0xff]   ;;  %v1030_v57 = vld [vmem:[#allocation4 + $0xa0] ss:$8 sps:$4 sm:$0xff]   ;;  %v1224_v60 = vsub.s32 0, %v68_v59  ;;  %v1229_v62 = vsub.s32 1, %v68_v59 }
  0x39   :  { %358 = vmatpush1.bf16.msra.mxu1 %v966_v13  ;;  %v65_v61 = vld [vmem:[%s1302_s2] sm:$0x3]  ;;  %vm827_vm1 = vcmask 64512  }
  0x3a   :  { %359 = vmatprep.subr.bf16.mxu1 %v967_v14  ;;  %v70_v63 = vrot.slane %v65_v61, %v1224_v60  ;;  %v74_v0 = vrot.slane %v65_v61, %v1229_v62  ;;  %v430_v58 = vld [vmem:[%s1306_s6] sm:$0x3] }
  0x3b   :  { %607 = vmatpush1.bf16.msra.mxu0 %v1006_v41  ;;  %v435_v59 = vrot.slane %v430_v58, %v1224_v60  ;;  %v439_v61 = vrot.slane %v430_v58, %v1229_v62 }
  0x3c   :  { %608 = vmatprep.subr.bf16.mxu0 %v1011_v42 }
  0x3d   :  { %360 = vmatpush1.bf16.msra.mxu1 %v969_v15  ;;  %v1035_v15 = vld [vmem:[#allocation4 + $0xb4] ss:$8 sps:$4 sm:$0xff]  }
  0x3e   :  { %361 = vmatprep.subr.bf16.mxu1 %v970_v16  ;;  %v1033_v16 = vld [vmem:[#allocation4 + $0xb0] ss:$8 sps:$4 sm:$0xff]  }
  0x3f   :  { %609 = vmatpush1.bf16.msra.mxu0 %v1009_v43 }
  0x40   :  { %610 = vmatprep.subr.bf16.mxu0 %v1014_v44 }
  0x41   :  { %362 = vmatpush1.bf16.msra.mxu1 %v972_v17  ;;  %v1038_v17 = vld [vmem:[#allocation4 + $0xc4] ss:$8 sps:$4 sm:$0xff]  }
  0x42   :  { %363 = vmatprep.subr.bf16.mxu1 %v973_v18  ;;  %v1036_v18 = vld [vmem:[#allocation4 + $0xc0] ss:$8 sps:$4 sm:$0xff]  }
  0x43   :  { %611 = vmatpush1.bf16.msra.mxu0 %v1012_v45 }
  0x44   :  { %612 = vmatprep.subr.bf16.mxu0 %v1017_v46 }
  0x45   :  { %364 = vmatpush1.bf16.msra.mxu1 %v975_v19  ;;  %v1039_v19 = vld [vmem:[#allocation4 + $0xd0] ss:$8 sps:$4 sm:$0xff]  }
  0x46   :  { %365 = vmatprep.subr.bf16.mxu1 %v976_v20  ;;  %v1041_v20 = vld [vmem:[#allocation4 + $0xd4] ss:$8 sps:$4 sm:$0xff]  }
  0x47   :  { %613 = vmatpush1.bf16.msra.mxu0 %v1015_v47 }
  0x48   :  { %614 = vmatprep.subr.bf16.mxu0 %v1020_v48  ;;  %v1054_v48 = vld [vmem:[%s1307_s7 + $0x58] sm:$0xff]  }
  0x49   :  { %366 = vmatpush1.bf16.msra.mxu1 %v978_v21  ;;  %v1044_v21 = vld [vmem:[#allocation4 + $0xe4] ss:$8 sps:$4 sm:$0xff]  }
  0x4a   :  { %367 = vmatprep.subr.bf16.mxu1 %v979_v22  ;;  %v1042_v22 = vld [vmem:[#allocation4 + $0xe0] ss:$8 sps:$4 sm:$0xff]  }
  0x4b   :  { %615 = vmatpush1.bf16.msra.mxu0 %v1018_v49  ;;  %v1055_v49 = vld [vmem:[%s1307_s7 + $0x18] sm:$0xff]  }
  0x4c   :  { %616 = vmatprep.subr.bf16.mxu0 %v1023_v50  ;;  %v1056_v50 = vld [vmem:[%s1307_s7 + $0x60] sm:$0xff]  }
  0x4d   :  { %368 = vmatpush1.bf16.msra.mxu1 %v981_v23  ;;  %v1047_v23 = vld [vmem:[#allocation4 + $0xf4] ss:$8 sps:$4 sm:$0xff]  }
  0x4e   :  { %369 = vmatprep.subr.bf16.mxu1 %v982_v24  ;;  %v1045_v24 = vld [vmem:[#allocation4 + $0xf0] ss:$8 sps:$4 sm:$0xff]  }
  0x4f   :  { %617 = vmatpush1.bf16.msra.mxu0 %v1021_v51  ;;  %v1057_v51 = vld [vmem:[%s1307_s7 + $0x20] sm:$0xff]  }
  0x50   :  { %618 = vmatprep.subr.bf16.mxu0 %v1026_v52  ;;  %v1058_v52 = vld [vmem:[%s1307_s7 + $0x68] sm:$0xff]  }
  0x51   :  { %370 = vmatpush1.bf16.msra.mxu1 %v984_v25  ;;  %v1048_v25 = vld [vmem:[%s1307_s7 + $0x40] sm:$0xff]  }
  0x52   :  { %371 = vmatprep.subr.bf16.mxu1 %v985_v26  ;;  %v1049_v26 = vld [vmem:[%s1307_s7] sm:$0xff]  }
  0x53   :  { %619 = vmatpush1.bf16.msra.mxu0 %v1024_v53  ;;  %v1059_v53 = vld [vmem:[%s1307_s7 + $0x28] sm:$0xff]  }
  0x54   :  { %620 = vmatprep.subr.bf16.mxu0 %v1029_v54  ;;  %v1060_v54 = vld [vmem:[%s1307_s7 + $0x70] sm:$0xff]  }
  0x55   :  { %372 = vmatpush1.bf16.msra.mxu1 %v987_v27  ;;  %v1050_v27 = vld [vmem:[%s1307_s7 + $0x48] sm:$0xff]  }
  0x56   :  { %373 = vmatprep.subr.bf16.mxu1 %v988_v28  ;;  %v1051_v28 = vld [vmem:[%s1307_s7 + $0x8] sm:$0xff]  }
  0x57   :  { %621 = vmatpush1.bf16.msra.mxu0 %v1027_v55  ;;  %v1061_v55 = vld [vmem:[%s1307_s7 + $0x30] sm:$0xff]  }
  0x58   :  { %622 = vmatprep.subr.bf16.mxu0 %v1032_v56  ;;  %v1062_v56 = vld [vmem:[%s1307_s7 + $0x78] sm:$0xff]  }
  0x59   :  { %374 = vmatpush1.bf16.msra.mxu1 %v990_v29  ;;  %v1052_v29 = vld [vmem:[%s1307_s7 + $0x50] sm:$0xff]  }
  0x5a   :  { %375 = vmatprep.subr.bf16.mxu1 %v991_v30  ;;  %v1053_v30 = vld [vmem:[%s1307_s7 + $0x10] sm:$0xff]  }
  0x5b   :  { %623 = vmatpush1.bf16.msra.mxu0 %v1030_v57  ;;  %v1063_v57 = vld [vmem:[%s1307_s7 + $0x38] sm:$0xff]  }
  0x5c   :  { %624 = vmatprep.subr.bf16.mxu0 %v1035_v15 }
  0x5d   :  { %376 = vmatpush1.bf16.msra.mxu1 %v993_v31  ;;  %v177_v31 = vld [vmem:[%s1304_s4] sm:$0x3] }
  0x5e   :  { %377 = vmatprep.subr.bf16.mxu1 %v994_v32  ;;  %v182_v32 = vrot.slane %v177_v31, %v1224_v60 }
  0x5f   :  { %625 = vmatpush1.bf16.msra.mxu0 %v1033_v16 }
  0x60   :  { %626 = vmatprep.subr.bf16.mxu0 %v1038_v17 }
  0x61   :  { %378 = vmatpush1.bf16.msra.mxu1 %v996_v33  ;;  %v186_v33 = vrot.slane %v177_v31, %v1229_v62 }
  0x62   :  { %379 = vmatprep.subr.bf16.mxu1 %v997_v34 }
  0x63   :  { %627 = vmatpush1.bf16.msra.mxu0 %v1036_v18 }
  0x64   :  { %628 = vmatprep.subr.bf16.mxu0 %v1041_v20 }
  0x65   :  { %380 = vmatpush1.bf16.msra.mxu1 %v999_v35 }
  0x66   :  { %921 = vmatprep.subr.bf16.mxu1 %v1048_v25 }
  0x67   :  { %629 = vmatpush1.bf16.msra.mxu0 %v1039_v19 }
  0x68   :  { %630 = vmatprep.subr.bf16.mxu0 %v1044_v21 }
  0x6b   :  { %631 = vmatpush1.bf16.msra.mxu0 %v1042_v22 }
  0x6c   :  { %632 = vmatprep.subr.bf16.mxu0 %v1047_v23 }
  0x6f   :  { %633 = vmatpush1.bf16.msra.mxu0 %v1045_v24 }
  0xfd   :  { %v130_v1 = vpop.f32.mrb[0].mxu0 }
  0xfe   :  { %v131_v2 = vadd.f32 %v130_v1, %v70_v63  ;;  %v132_v3 = vpop.f32.mrb[1].mxu0 }
  0xff   :  { %v133_v4 = vadd.f32 %v132_v3, %v74_v0  ;;  %v134_v5 = vpop.f32.mrb[2].mxu0 }
 0x100   :  { %1064 = vtanh.f32 %v131_v2  ;;  %v135_v6 = vadd.f32 %v134_v5, %v70_v63  ;;  %v136_v7 = vpop.f32.mrb[3].mxu0 }
 0x101   :  { %1066 = vtanh.f32 %v133_v4  ;;  %v137_v8 = vadd.f32 %v136_v7, %v74_v0 }
 0x102   :  { %1068 = vtanh.f32 %v135_v6 }
 0x103   :  { %1070 = vtanh.f32 %v137_v8 }
 0x10a   :  { %v1065_v9 = vpop.eup %1064 }
 0x10b   :  { %v1067_v10 = vpop.eup %1066 }
 0x10c   :  { %v1069_v11 = vpop.eup %1068 }
 0x10d   :  { %v1071_v12 = vpop.eup %1070  ;;  %v143_v13 = vpack.c.bf16 %v1069_v11, %v1065_v9 }
 0x10e   :  { %v144_v14 = vpack.c.bf16 %v1071_v12, %v1067_v10  ;;  %v904_v12 = vld [vmem:[%s1308_s8] ss:$0 sm:$0xff] }
 0x110   :  { %381 = vmatprep.mubr.bf16.mxu1 %v144_v14 }
 0x111   :  { %382 = vmatmul.mubr.bf16.vlgmr.msra.gmra.mrb[0].mxu1 %v143_v13 }
 0x112   :  { %922 = vmatpush3.bf16.msra.mxu1 %v1049_v26 }
 0x113   :  { %923 = vmatprep.subr.bf16.mxu1 %v1050_v27 }
 0x116   :  { %924 = vmatpush3.bf16.msra.mxu1 %v1051_v28 }
 0x117   :  { %925 = vmatprep.subr.bf16.mxu1 %v1052_v29 }
 0x11a   :  { %926 = vmatpush3.bf16.msra.mxu1 %v1053_v30 }
 0x11b   :  { %927 = vmatprep.subr.bf16.mxu1 %v1054_v48 }
 0x11e   :  { %928 = vmatpush3.bf16.msra.mxu1 %v1055_v49 }
 0x11f   :  { %929 = vmatprep.subr.bf16.mxu1 %v1056_v50 }
 0x122   :  { %930 = vmatpush3.bf16.msra.mxu1 %v1057_v51 }
 0x123   :  { %931 = vmatprep.subr.bf16.mxu1 %v1058_v52 }
 0x126   :  { %932 = vmatpush3.bf16.msra.mxu1 %v1059_v53 }
 0x127   :  { %933 = vmatprep.subr.bf16.mxu1 %v1060_v54 }
 0x12a   :  { %934 = vmatpush3.bf16.msra.mxu1 %v1061_v55 }
 0x12b   :  { %935 = vmatprep.subr.bf16.mxu1 %v1062_v56 }
 0x12e   :  { %936 = vmatpush3.bf16.msra.mxu1 %v1063_v57 }
 0x1e4   :  { %v383_v34 = vpop.f32.mrb[0].mxu1 }
 0x1e5   :  { %v384_v35 = vadd.f32 %v383_v34, %v182_v32  ;;  %v385_v36 = vpop.f32.mrb[1].mxu1 }
 0x1e6   :  { %v386_v37 = vadd.f32 %v385_v36, %v186_v33  ;;  %v387_v38 = vpop.f32.mrb[2].mxu1 }
 0x1e7   :  { %1072 = vtanh.f32 %v384_v35  ;;  %v388_v39 = vadd.f32 %v387_v38, %v182_v32  ;;  %v389_v40 = vpop.f32.mrb[3].mxu1 }
 0x1e8   :  { %1074 = vtanh.f32 %v386_v37  ;;  %v390_v41 = vadd.f32 %v389_v40, %v186_v33 }
 0x1e9   :  { %1076 = vtanh.f32 %v388_v39 }
 0x1ea   :  { %1078 = vtanh.f32 %v390_v41 }
 0x1f1   :  { %v1073_v42 = vpop.eup %1072 }
 0x1f2   :  { %v1075_v43 = vpop.eup %1074 }
 0x1f3   :  { %v1077_v44 = vpop.eup %1076 }
 0x1f4   :  { %v1079_v45 = vpop.eup %1078  ;;  %v396_v46 = vpack.c.bf16 %v1077_v44, %v1073_v42 }
 0x1f5   :  { %v397_v47 = vpack.c.bf16 %v1079_v45, %v1075_v43 }
 0x1f7   :  { %634 = vmatprep.mubr.bf16.mxu0 %v397_v47 }
 0x1f8   :  { %635 = vmatmul.mubr.bf16.vlgmr.msra.gmra.mrb[4].mxu0 %v396_v46 }
 0x2cb   :  { %v636_v63 = vpop.f32.mrb[4].mxu0 }
 0x2cc   :  { %v637_v0 = vadd.f32 %v636_v63, %v435_v59  ;;  %v638_v1 = vpop.f32.mrb[5].mxu0 }
 0x2cd   :  { %v639_v2 = vadd.f32 %v638_v1, %v439_v61  ;;  %v640_v3 = vpop.f32.mrb[6].mxu0 }
 0x2ce   :  { %1080 = vtanh.f32 %v637_v0  ;;  %v641_v4 = vadd.f32 %v640_v3, %v435_v59  ;;  %v642_v5 = vpop.f32.mrb[7].mxu0 }
 0x2cf   :  { %1082 = vtanh.f32 %v639_v2  ;;  %v643_v6 = vadd.f32 %v642_v5, %v439_v61 }
 0x2d0   :  { %1084 = vtanh.f32 %v641_v4 }
 0x2d1   :  { %1086 = vtanh.f32 %v643_v6 }
 0x2d8   :  { %v1081_v7 = vpop.eup %1080 }
 0x2d9   :  { %v1083_v8 = vpop.eup %1082 }
 0x2da   :  { %v1085_v9 = vpop.eup %1084 }
 0x2db   :  { %v1087_v10 = vpop.eup %1086  ;;  %v649_v11 = vpack.c.bf16 %v1085_v9, %v1081_v7 }
 0x2dc   :  { %v650_v60 = vpack.c.bf16 %v1087_v10, %v1083_v8 }
 0x2de   :  { %818 = vmatprep.mubr.bf16.mxu1 %v650_v60 }
 0x2df   :  { %819 = vmatmul.mubr.bf16.vlgmr.msra.gmra.mrb[4].mxu1 %v649_v11 }
 0x3b2   :  { %v937_v62 = vpop.f32.mrb[4].mxu1 }
 0x3b3   :  { %v938_v13 = vpop.f32.mrb[5].mxu1 }
 0x3b4   :  { %v939_v14 = vadd.f32 %v938_v13, %v937_v62  ;;  %v940_v15 = vpop.f32.mrb[6].mxu1 }
 0x3b5   :  { %v941_v16 = vpop.f32.mrb[7].mxu1 }
 0x3b6   :  { %v821_v17 = vadd.f32 %v939_v14, %v904_v12  ;;  %v942_v18 = vadd.f32 %v941_v16, %v940_v15 }
 0x3b8   :  { %828 = vst.msk [vmem:[%s1309_s9] sm:$0xff] %vm827_vm1, %v821_v17  ;;  %v824_v19 = vadd.f32 %v942_v18, %v904_v12 }
 0x3ba   :  { %829 = vst.msk [vmem:[%s1309_s9 + $0x8] sm:$0xff] %vm827_vm1, %v824_v19 }
 0x3bb   :  { %834 = vsyncpa [#allocation3], 1 }
 0x3bc   :  { %835 = vsyncpa [#allocation5], 1 }

</bundles_post_ra>
